<compile_context>
chip_gen: v6e
topology: v6e:2x2x1
jax: 0.10.0
libtpu: 0.0.40
codegen_flags: <defaults>
</compile_context>

<pallas_src>
import jax
import jax.numpy as jnp
from jax.experimental import pallas as pl
from jax.experimental.pallas import tpu as pltpu

MIN_VELOCITY = 1500.0
MAX_VELOCITY = 6000.0

_LANE = 128                              # last dim: exactly one lane width -> unmasked vst
_TARGET_BLOCK_BYTES = 4 * 1024 * 1024    # ~4 MiB blocks (v7x overhead amortization)
_MIN_GRID_STEPS = 4                      # keep >= 2 grid steps per TC on v7x
_MIN_PALLAS_BYTES = 1 * 1024 * 1024      # below this, XLA fusion beats kernel overhead
_VMEM_LIMIT_BYTES = 32 * 1024 * 1024


def _physics_constraint_kernel(x_ref, o_ref):
    x = x_ref[...]
    if x.dtype != jnp.float32:
        x = x.astype(jnp.float32)
    normalized = jax.nn.sigmoid(x)                       # EUP: free under the mem roofline
    constrained = normalized * (MAX_VELOCITY - MIN_VELOCITY) + MIN_VELOCITY
    o_ref[...] = constrained.astype(o_ref.dtype)


def _jnp_forward(x: jax.Array) -> jax.Array:
    y = jax.nn.sigmoid(x.astype(jnp.float32))
    return (y * (MAX_VELOCITY - MIN_VELOCITY) + MIN_VELOCITY).astype(x.dtype)


def _select_row_tile(rows: int, itemsize: int) -> int:
    """Dtype-invariant block bytes, clamped so the grid keeps >= 4 steps."""
    quantum = max(8, 32 // itemsize)                     # 8 f32 / 16 bf16 / 32 int8
    row_tile = max(quantum, _TARGET_BLOCK_BYTES // (_LANE * itemsize))
    row_tile = (row_tile // quantum) * quantum
    while row_tile > quantum and pl.cdiv(rows, row_tile) < _MIN_GRID_STEPS:
        row_tile = max(quantum, (row_tile // 2 // quantum) * quantum)
    return row_tile


def physics_constraint_layer(velocity_map: jax.Array, *, force_pallas: bool = False) -> jax.Array:
    """Apply physics constraints to velocity predictions (NCHW or any shape)."""
    orig_shape = velocity_map.shape
    dtype = velocity_map.dtype
    itemsize = jnp.dtype(dtype).itemsize
    n = velocity_map.size

    aligned = (n > 0) and (n % _LANE == 0)
    small = n * itemsize < _MIN_PALLAS_BYTES
    if (not aligned) or (small and not force_pallas):
        # Ragged or tiny: XLA's fused elementwise (1 read + 1 write) is optimal;
        # pad/slice/concat plumbing around a custom call would triple HBM traffic.
        return _jnp_forward(velocity_map)

    rows = n // _LANE
    x2d = velocity_map.reshape(rows, _LANE)              # zero-copy bitcast reshape
    row_tile = _select_row_tile(rows, itemsize)
    grid = (pl.cdiv(rows, row_tile),)

    out2d = pl.pallas_call(
        _physics_constraint_kernel,
        out_shape=jax.ShapeDtypeStruct((rows, _LANE), dtype),
        grid_spec=pltpu.PrefetchScalarGridSpec(
            num_scalar_prefetch=0,
            grid=grid,
            in_specs=[pl.BlockSpec((row_tile, _LANE), lambda i: (i, 0))],
            out_specs=pl.BlockSpec((row_tile, _LANE), lambda i: (i, 0)),
        ),
        compiler_params=pltpu.CompilerParams(
            dimension_semantics=("parallel",),
            vmem_limit_bytes=_VMEM_LIMIT_BYTES,
        ),
        cost_estimate=pl.CostEstimate(
            flops=4 * n,
            transcendentals=n,
            bytes_accessed=2 * n * itemsize,
        ),
    )(x2d)

    return out2d.reshape(orig_shape)


def _reference(velocity_map):
    return _jnp_forward(velocity_map)


if __name__ == "__main__":
    key = jax.random.PRNGKey(0)
    k1, k2, k3, k4 = jax.random.split(key, 4)

    # 1) Small NCHW input (what the conv head would emit).  force_pallas=True so
    #    the demo actually exercises the Pallas kernel at this size.
    x = jax.random.normal(k1, (2, 4, 16, 16), dtype=jnp.float32) * 3.0
    out = physics_constraint_layer(x, force_pallas=True)
    jax.block_until_ready(out)
    ref = _reference(x)
    assert out.shape == x.shape and out.dtype == x.dtype
    assert jnp.allclose(out, ref, rtol=1e-5, atol=1e-3), "mismatch vs reference (small f32)"
    assert float(out.min()) >= MIN_VELOCITY - 1e-3
    assert float(out.max()) <= MAX_VELOCITY + 1e-3

    # 2) Larger aligned input: takes the default Pallas path (>= 1 MiB) and
    #    exercises the row-tile clamping / multi-step grid.
    x_big = jax.random.normal(k2, (2, 4, 128, 256), dtype=jnp.float32) * 3.0
    out_big = physics_constraint_layer(x_big)
    jax.block_until_ready(out_big)
    ref_big = _reference(x_big)
    assert jnp.allclose(out_big, ref_big, rtol=1e-5, atol=1e-3), "mismatch vs reference (large f32)"

    # 3) Ragged size (n % 128 != 0): fused-jnp fallback path (no pad/slice traffic).
    x_rag = jax.random.normal(k3, (3, 5, 7, 11), dtype=jnp.float32) * 3.0
    out_rag = physics_constraint_layer(x_rag)
    jax.block_until_ready(out_rag)
    ref_rag = _reference(x_rag)
    assert out_rag.shape == x_rag.shape and out_rag.dtype == x_rag.dtype
    assert jnp.allclose(out_rag, ref_rag, rtol=1e-5, atol=1e-3), "mismatch vs reference (ragged)"

    # 4) bf16 input through the Pallas path (dtype-invariant tiling; 16-row quantum).
    x_bf = (jax.random.normal(k4, (2, 4, 16, 16), dtype=jnp.float32) * 3.0).astype(jnp.bfloat16)
    out_bf = physics_constraint_layer(x_bf, force_pallas=True)
    jax.block_until_ready(out_bf)
    ref_bf = _reference(x_bf)
    assert out_bf.shape == x_bf.shape and out_bf.dtype == jnp.bfloat16
    assert jnp.allclose(out_bf.astype(jnp.float32), ref_bf.astype(jnp.float32),
                        rtol=1e-2, atol=32.0), "mismatch vs reference (bf16)"

    print("KERNEL_OK")
</pallas_src>

<mosaic_0001>
module attributes {stable_mosaic.version = 11 : i64} {
  func.func @_physics_constraint_kernel(%arg0: i32, %arg1: memref<8x128xf32, #tpu.memory_space<vmem>>, %arg2: memref<8x128xf32, #tpu.memory_space<vmem>>) attributes {dimension_semantics = [#tpu.dimension_semantics<parallel>], iteration_bounds = array<i64: 2>, scalar_prefetch = 0 : i64, scratch_operands = 0 : i64, tpu.core_type = #tpu.core_type<tc>, window_params = [{transform_indices = @transform_0, window_bounds = array<i64: 8, 128>}, {transform_indices = @transform_1, window_bounds = array<i64: 8, 128>}]} {
    %c0 = arith.constant 0 : index
    %c0_0 = arith.constant 0 : index
    %0 = vector.load %arg1[%c0, %c0_0] : memref<8x128xf32, #tpu.memory_space<vmem>>, vector<8x128xf32>
    %1 = arith.negf %0 : vector<8x128xf32>
    %2 = math.exp %1 : vector<8x128xf32>
    %cst = arith.constant 1.000000e+00 : f32
    %3 = vector.broadcast %cst : f32 to vector<8x128xf32>
    %4 = arith.addf %3, %2 : vector<8x128xf32>
    %5 = arith.divf %3, %4 : vector<8x128xf32>
    %cst_1 = arith.constant 4.500000e+03 : f32
    %6 = vector.broadcast %cst_1 : f32 to vector<8x128xf32>
    %7 = arith.mulf %5, %6 : vector<8x128xf32>
    %cst_2 = arith.constant 1.500000e+03 : f32
    %8 = vector.broadcast %cst_2 : f32 to vector<8x128xf32>
    %9 = arith.addf %7, %8 : vector<8x128xf32>
    %c0_3 = arith.constant 0 : index
    %c0_4 = arith.constant 0 : index
    %10 = vector.load %arg2[%c0_3, %c0_4] : memref<8x128xf32, #tpu.memory_space<vmem>>, vector<8x128xf32>
    tpu.vector_store %arg2[%c0_3, %c0_4], %9 {strides = array<i32>} : memref<8x128xf32, #tpu.memory_space<vmem>>, vector<8x128xf32>,
    return
  }
  func.func @transform_0(%arg0: i32) -> (i32, i32) {
    %c0_i32 = arith.constant 0 : i32
    %c0_i32_0 = arith.constant 0 : i32
    return %arg0, %c0_i32 : i32, i32
  }
  func.func @transform_1(%arg0: i32) -> (i32, i32) {
    %c0_i32 = arith.constant 0 : i32
    %c0_i32_0 = arith.constant 0 : i32
    return %arg0, %c0_i32 : i32, i32
  }
}

</mosaic_0001>

<bundles_post_ra>
// kernel: tpu_custom_call.1
= control target key start
LH: loop header
LB: loop body
LE: loop exit
PB: predicated region body
PF: predicated region fallthrough
CT: control target
= control target key end

     0   :  { %6 = vsyncpa [#allocation3], 0  ;;  %s536_s0 = inlined_call_operand.hbm [shape: f32[16,128], index: 0, kind: input, shape index: {}]   ;;  %s537_s1 = inlined_call_operand.hbm [shape: f32[16,128], index: 1, kind: output, shape index: {}]  }
   0x1   :  { %8 = vsyncpa [#allocation3 + $0x1], 0 }
   0x2   :  { %9 = vsyncpa [#allocation4], 0 }
   0x3   :  { %11 = vsyncpa [#allocation4 + $0x1], 0  ;;  %s395_s6 = smov 0   ;;  %s397_s7 = smov 0  }
   0x4   :  { %s399_s8 = smov 0   ;;  %s401_s9 = smov 0  }
   0x5 LB: > { %s416_s10 = sadd.s32 4294967295, %s381_s9   ;;  %s226_s11 = sadd.s32 4294967294, %s381_s9   ;;  %s381_s9 = sphi %s401_s9, %s554_s9   ;;  %s377_s8 = sphi %s399_s8, %s553_s8   ;;  %s373_s7 = sphi %s397_s7, %s552_s7   ;;  %s369_s6 = sphi %s395_s6, %s551_s6  }
   0x6   : > { %s420_s12 = sadd.s32 1, %s381_s9   ;;  %s24_s13 = sadd.s32 1, %s377_s8 }
   0x7   : > { %s21_s14 = ssub.s32 %s381_s9, %s420_s12  ;;  %p31_p0 = scmp.ne.s32.totalorder %s377_s8, %s373_s7 }
   0x8   : > { %p22_p1 = scmp.eq.s32.totalorder %s21_s14, 0  ;;  %p32_p2 = scmp.eq.s32.totalorder %s381_s9, 0 }
   0x9   : > { %p37_p3 = scmp.ne.s32.totalorder %s373_s7, %s369_s6  ;;  %p38_p4 = scmp.eq.s32.totalorder %s416_s10, 0 }
   0xa   : > { %s432_s15 = scalar_select %p22_p1, %s377_s8, %s24_s13  }
   0xb   : > { %p434_p5 = por %p32_p2, %p31_p0  ;;  %p438_p6 = por %p38_p4, %p37_p3 }
   0xc   : > { %p61_p7 = scmp.eq.s32.totalorder %s416_s10, 1  ;;  %p67_p8 = scmp.eq.s32.totalorder %s226_s11, 1 }
   0xd   : > { %s541_s17 = scalar_select %p438_p6, 1, 0 }
   0xe   : > { %p251_p10 = scmp.lt.s32.totalorder %s381_s9, 2  ;;  %p445_p11 = por %p61_p7, %p31_p0 }
   0xf   : > { %p449_p12 = por %p67_p8, %p37_p3  ;;  %s87_s20 = sand.u32 1, %s377_s8  }
  0x10   : > { %s542_s18 = scalar_select %p445_p11, 1, 0 }
  0x11   : > { %s543_s19 = scalar_select %p449_p12, 1, 0 }
  0x12   : > { %s230_s21 = sshll.u32 %s381_s9, 7  ;;  %s229_s22 = sshll.u32 %s87_s20, 3 }
  0x13   : > { %s458_s25 = scalar_lea.hbm %s536_s0, %s230_s21  ;;  %s91_s26 = scalar_lea.vmem [#allocation2], %s229_s22 }
  0x14   : > { %s98_s27 = sshll.u32 %s91_s26, 4  ;;  %p462_p13 = pnand %p251_p10, %p434_p5  ;;  %s466_s27 = int_to_ptr.vmem [resolvable:$true] %s98_s27 }
  0x15   : > { %s88_s29 = scalar_lea.sflag [#allocation3], %s87_s20  ;;  %s289_s30 = scalar_lea.hbm %s458_s25, 128 }
  0x16   : > { %p290_p2 = scmp.ne.s32.totalorder %s458_s25, %s289_s30  ;;  %p291_p3 = pneg %p462_p13 }
  0x17   : > { %s294_s4 = scalar_lea.hbm %s536_s0, 256  ;;  %p295_p5 = scmp.lt.s32.totalorder %s458_s25, %s536_s0 }
  0x18   : > { %p292_p4 = pnand %p291_p3, %p290_p2  ;;  %p296_p8 = scmp.lt.s32.totalorder %s294_s4, %s289_s30 }
  0x1a   : > { %p293_p7 = pneg %p292_p4  ;;  %p297_p10 = por %p296_p8, %p295_p5 }
  0x1c   : > { %p298_p9 = pnand %p297_p10, %p293_p7 }
  0x1e   : > { %301 = shalt.err (!%p298_p9)
}
  0x1f   : > { %s302_s13 = scalar_lea.vmem %s466_s27, 128  ;;  %s383_s14 = smov [#allocation2]  }
  0x20   : > { %p303_p0 = scmp.ne.s32.totalorder %s466_s27, %s302_s13  ;;  %s307_s16 = sshll.u32 %s383_s14, 4  ;;  %s308_s16 = int_to_ptr.vmem [resolvable:$false] %s307_s16 }
  0x21   : > { %s309_s20 = scalar_lea.vmem %s308_s16, 256  ;;  %p310_p4 = scmp.lt.s32.totalorder %s466_s27, %s308_s16 }
  0x22   : > { %p305_p1 = pnand %p303_p0, %p291_p3  ;;  %p311_p12 = scmp.lt.s32.totalorder %s309_s20, %s302_s13 }
  0x24   : > { %p306_p2 = pneg %p305_p1  ;;  %p312_p11 = por %p311_p12, %p310_p4 }
  0x26   : > { %p313_p6 = pnand %p312_p11, %p306_p2 }
  0x28   : > { %316 = shalt.err (!%p313_p6)
}
  0x29   : > { %246 = dma.hbm_to_vmem [thread:$0]  (!%p462_p13), %s458_s25, 128, %s466_s27, %s88_s29  }
  0x2a   : > { %p545_p9 = scmp.lt.s32.totalorder %s381_s9, 3  ;;  %p546_p7 = scmp.ge.s32.totalorder %s381_s9, 1 }
  0x2c   : > { %p104_p0 = pnand %p546_p7, %p545_p9 }
  0x2d   : > { %s493_s21 = sand.u32 (!%p104_p0), 1, %s373_s7   ;;  %p547_p6 = scmp.ne.s32.totalorder (!%p104_p0), %s541_s17, 0 }
  0x2e   : > { %107 = sbr.rel (%p104_p0) target bundleno = 102 (0x66), region = 24  ;;  %s232_s22 = sshll.u32 (!%p104_p0), %s493_s21, 3 }
  0x2f   : > { %s110_s23 = scalar_lea.sflag (!%p104_p0), [#allocation3], %s493_s21  ;;  %s113_s24 = scalar_lea.vmem (!%p104_p0), [#allocation2], %s232_s22 }
  0x33   : > { %360 = dma.done.wait (%p547_p6), %s110_s23, 128  }
  0x34   : > { %362 = vsyncadd (%p547_p6), %s110_s23, 4294967168  ;;  %v132_v0 = vld [vmem:[%s113_s24] sm:$0xff]  ;;  %s131_s25 = scalar_lea.vmem [#allocation5], %s232_s22  ;;  %s236_s27 = sshll.u32 %s416_s10, 7 }
  0x35   : > { %v234_v1 = vmul.f32 -1.442695, %v132_v0  ;;  %s156_s26 = sshll.u32 %s131_s25, 4  ;;  %s154_s17 = scalar_lea.hbm %s537_s1, %s236_s27  ;;  %s157_s26 = int_to_ptr.vmem [resolvable:$true] %s156_s26 }
  0x36   : > { %s143_s30 = scalar_lea.sflag [#allocation4], %s493_s21  ;;  %s317_s2 = scalar_lea.vmem %s157_s26, 128 }
  0x37   : > { %285 = vpow2.f32 %v234_v1  ;;  %p318_p11 = scmp.ne.s32.totalorder %s157_s26, %s317_s2  ;;  %p548_p12 = scmp.ne.s32.totalorder %s542_s18, 0 }
  0x38   : > { %s384_s3 = smov [#allocation5]  }
  0x39   : > { %p319_p13 = pnand %p318_p11, %p548_p12  ;;  %s321_s4 = sshll.u32 %s384_s3, 4  ;;  %s322_s4 = int_to_ptr.vmem [resolvable:$false] %s321_s4 }
  0x3a   : > { %s323_s5 = scalar_lea.vmem %s322_s4, 256  ;;  %p324_p3 = scmp.lt.s32.totalorder %s157_s26, %s322_s4 }
  0x3b   : > { %p320_p1 = pneg %p319_p13  ;;  %p325_p5 = scmp.lt.s32.totalorder %s323_s5, %s317_s2 }
  0x3d   : > { %p326_p8 = por %p325_p5, %p324_p3 }
  0x3f   : > { %p327_p10 = pnand %p326_p8, %p320_p1 }
  0x44   : > { %v286_v2 = vpop.eup %285 }
  0x45   : > { %v136_v3 = vadd.f32 1.0, %v286_v2 }
  0x47   : > { %287 = vrcp.f32 %v136_v3 }
  0x54   : > { %v288_v4 = vpop.eup %287 }
  0x55   : > { %v139_v5 = vmul.f32 4500.0, %v288_v4 }
  0x57   : > { %v140_v6 = vadd.f32 1500.0, %v139_v5 }
  0x59   : > { %141 = vst [vmem:[%s131_s25] sm:$0xff] %v140_v6 }
  0x5a   : > { %330 = shalt.err (!%p327_p10)
}
  0x5b   : > { %s331_s10 = scalar_lea.hbm %s154_s17, 128  ;;  %s335_s14 = scalar_lea.hbm %s537_s1, 256 }
  0x5c   : > { %p332_p2 = scmp.ne.s32.totalorder %s154_s17, %s331_s10  ;;  %p336_p7 = scmp.lt.s32.totalorder %s154_s17, %s537_s1 }
  0x5d   : > { %p337_p0 = scmp.lt.s32.totalorder %s335_s14, %s331_s10 }
  0x5e   : > { %p333_p4 = pnand %p332_p2, %p548_p12 }
  0x5f   : > { %p338_p6 = por %p337_p0, %p336_p7 }
  0x60   : > { %p334_p9 = pneg %p333_p4 }
  0x62   : > { %p339_p11 = pnand %p338_p6, %p334_p9 }
  0x64   : > { %342 = shalt.err (!%p339_p11)
}
  0x65   : > { %241 = dma.vmem_to_hbm [thread:$0]  (%p548_p12), %s157_s26, 128, %s154_s17, %s143_s30  }
  0x66 PF: > { %s168_s21 = sand.u32 1, %s369_s6   ;;  %p549_p13 = scmp.ne.s32.totalorder %s543_s19, 0 }
  0x67   : > { %p550_p1 = scmp.ge.s32.totalorder %s381_s9, 2  ;;  %s169_s22 = scalar_lea.sflag [#allocation4], %s168_s21 }
  0x69   : > { %p248_p3 = pnand %p550_p1, %p549_p13 }
  0x6b   : > { %p249_p5 = pneg %p248_p3 }
  0x6d   : > { %364 = dma.done.wait (%p249_p5), %s169_s22, 128  }
  0x6e   : > { %366 = vsyncadd (%p249_p5), %s169_s22, 4294967168  ;;  %p14_p8 = scmp.ge.s32.totalorder %s420_s12, 4   ;;  %s551_s6 = smov %s373_s7 }
  0x6f   : > { %s552_s7 = smov %s377_s8  ;;  %s553_s8 = smov %s432_s15 }
  0x70   : > { %s554_s9 = smov %s420_s12  ;;  %16 = sbr.rel (!%p14_p8) target bundleno = 5 (0x5), region = 69 }
  0x75   :  { %174 = vsyncpa [#allocation3], 1 }
  0x76   :  { %176 = vsyncpa [#allocation3 + $0x1], 1 }
  0x77   :  { %177 = vsyncpa [#allocation4], 1 }
  0x78   :  { %179 = vsyncpa [#allocation4 + $0x1], 1 }

</bundles_post_ra>
